<compile_context>
chip_gen: v7x
topology: tpu7x:2x2x1
jax: 0.10.0
libtpu: 0.0.40
codegen_flags: <defaults>
</compile_context>

<pallas_src>
import functools

import jax
import jax.numpy as jnp
from jax.experimental import pallas as pl
from jax.experimental.pallas import tpu as pltpu

_LANE = 128


def _ce_loss_kernel(x_ref, tgt_ref, fg_ref, *rest, num_classes, weighted,
                    num_fg_classes, rows_total, rows_per_tile, need_row_mask):
    """One (1, C, tr, L) logits tile -> accumulate sum(w * CE) into num_ref.

    x_ref   : (1, C, tr, L) logits in their native dtype (f32 / bf16)
    tgt_ref : (1, tr, L)    integer target class per pixel
    fg_ref  : (1, tr, L)    integer object label per pixel (0 is ignored)
    wtab_ref: (N, K) f32    per-sample weight-per-label table in SMEM (weighted only)
    num_ref : (1, tr, L) f32 running sum of w * CE (output-resident accumulator)
    """
    if weighted:
        wtab_ref, num_ref = rest
    else:
        (num_ref,) = rest

    n = pl.program_id(0)
    t = pl.program_id(1)

    @pl.when(t == 0)
    def _init():
        num_ref[...] = jnp.zeros_like(num_ref)

    tgt = tgt_ref[...].astype(jnp.int32)          # (1, tr, L)
    fg = fg_ref[...].astype(jnp.int32)            # (1, tr, L)

    # --- fused cross entropy over the small static channel axis --------------
    # Channel slices are read lazily from VMEM; max / exp-sum / target-select
    # are a short unrolled VPU + EUP chain (no XLU reduce, no MXU, no gather).
    m = x_ref[:, 0].astype(jnp.float32)           # (1, tr, L)
    for c in range(1, num_classes):
        m = jnp.maximum(m, x_ref[:, c].astype(jnp.float32))
    s = jnp.zeros_like(m)
    x_t = jnp.zeros_like(m)
    for c in range(num_classes):
        xc = x_ref[:, c].astype(jnp.float32)
        s = s + jnp.exp(xc - m)                   # EUP
        x_t = x_t + jnp.where(tgt == c, xc, 0.0)  # VPU select
    ce = (m + jnp.log(s)) - x_t                   # -log softmax[target]

    # --- in-kernel weight mask (generate_weight_mask, to_ignore=[0]) ---------
    if weighted:
        w = jnp.zeros_like(m)
        for k in range(1, num_fg_classes):        # label 0 ignored -> weight 0
            w = w + jnp.where(fg == k, wtab_ref[n, k], 0.0)
    else:
        w = jnp.where(fg == 0, 0.0, 1.0)

    contrib = w * ce
    if need_row_mask:
        # Ragged tail of the last row-tile: mask the product (not just the
        # weight) so garbage OOB logits can never inject NaN into the sum.
        row = t * rows_per_tile + jax.lax.broadcasted_iota(jnp.int32,
                                                           contrib.shape, 1)
        contrib = jnp.where(row < rows_total, contrib, 0.0)

    num_ref[...] += contrib


def _int_labels(a):
    """Accept narrow integer labels as-is; only cast unsupported dtypes."""
    if jnp.issubdtype(a.dtype, jnp.integer) and a.dtype.itemsize <= 4:
        return a
    return a.astype(jnp.int32)


def ce_loss_weighted_masked(x, target, fg_mask, *, weighted=False,
                            num_fg_classes=None, block_pixels=65536):
    """Equivalent of CELossWeightedMasked(weighted).forward(x, target, fg_mask).

    x        : [N, C, H, W] float logits (f32 or bf16; consumed in native dtype)
    target   : [N, H, W]    integer class labels in [0, C)
    fg_mask  : [N, H, W]    integer object labels; label 0 is ignored

    weighted=True requires num_fg_classes: a static upper bound such that every
    fg_mask label lies in [0, num_fg_classes).
    If sum(weight_mask) == 0 the result is NaN, same as the PyTorch reference.
    """
    # TODO(synk): torch.unique-style dynamic label discovery in
    # generate_weight_mask has no static Pallas equivalent; labels must lie in
    # [0, num_fg_classes) (labels >= the bound silently get weight 0).
    N, C, H, W = x.shape
    HW = H * W

    target = _int_labels(target)
    fg_mask = _int_labels(fg_mask)
    x_itemsize = x.dtype.itemsize

    # --- tiny [N,K] per-sample class-count table (no [N,H,W,K] one-hot) -------
    if weighted:
        if num_fg_classes is None:
            raise ValueError("weighted=True requires num_fg_classes")
        K = int(num_fg_classes)
        fg_flat = fg_mask.reshape(N, HW).astype(jnp.int32)
        counts = jnp.stack([jnp.sum(fg_flat == k, axis=1) for k in range(K)],
                           axis=1).astype(jnp.float32)            # [N, K]
        w_table = 1.0 / jnp.maximum(counts, 1.0)
        w_table = w_table.at[:, 0].set(0.0)                       # to_ignore = [0]
        den = jnp.sum(counts * w_table)                           # == sum(weight_mask)
    else:
        K = 0
        w_table = None
        den = jnp.sum((fg_mask != 0).astype(jnp.float32))

    # --- copy-free relayout: pixels become (rows, lanes) ----------------------
    if HW % _LANE == 0:
        rows_total, L = HW // _LANE, _LANE        # lane-dense; trailing-dim reshape only
        x_in = x.reshape(N, C, rows_total, L)
        tgt_in = target.reshape(N, rows_total, L)
        fg_in = fg_mask.reshape(N, rows_total, L)
    else:
        rows_total, L = H, W                      # native 4-D layout, zero copies
        x_in, tgt_in, fg_in = x, target, fg_mask

    # --- tile sizing (big tiles to amortize per-grid-step overhead) -----------
    min_item = min(x_itemsize, tgt_in.dtype.itemsize, fg_in.dtype.itemsize)
    sub = 8 * max(1, 4 // int(min_item))          # sublane multiple for packed dtypes
    tr_pixels = max(sub, (block_pixels // L) // sub * sub)
    tr_vmem = max(sub, ((8 * 1024 * 1024) // (C * L * x_itemsize)) // sub * sub)
    tr_cap = min(tr_pixels, tr_vmem)
    if rows_total <= tr_cap:
        tr, T = rows_total, 1
    else:
        tr = tr_cap
        T = pl.cdiv(rows_total, tr)
    need_row_mask = (rows_total % tr) != 0

    kernel = functools.partial(
        _ce_loss_kernel, num_classes=C, weighted=weighted, num_fg_classes=K,
        rows_total=rows_total, rows_per_tile=tr, need_row_mask=need_row_mask)

    in_specs = [
        pl.BlockSpec((1, C, tr, L), lambda n, t: (n, 0, t, 0)),
        pl.BlockSpec((1, tr, L), lambda n, t: (n, t, 0)),
        pl.BlockSpec((1, tr, L), lambda n, t: (n, t, 0)),
    ]
    args = [x_in, tgt_in, fg_in]
    if weighted:
        in_specs.append(pl.BlockSpec(memory_space=pltpu.MemorySpace.SMEM))
        args.append(w_table)

    num = pl.pallas_call(
        kernel,
        out_shape=jax.ShapeDtypeStruct((N, tr, L), jnp.float32),
        grid=(N, T),
        in_specs=in_specs,
        out_specs=pl.BlockSpec((1, tr, L), lambda n, t: (n, 0, 0)),
        compiler_params=pltpu.CompilerParams(
            dimension_semantics=("parallel", "arbitrary"),
            vmem_limit_bytes=32 * 1024 * 1024,
        ),
    )(*args)

    # Single cross-lane reduction + division, once, outside the hot loop.
    return jnp.sum(num) / den


# ----------------------------- pure-JAX reference -----------------------------
def _generate_weight_mask_ref(fg_mask, *, weighted, num_classes):
    fg = fg_mask.astype(jnp.int32)
    if weighted:
        one_hot = (fg[..., None] ==
                   jnp.arange(num_classes, dtype=jnp.int32)).astype(jnp.float32)
        counts = jnp.sum(one_hot, axis=(1, 2))
        inv = 1.0 / jnp.maximum(counts, 1.0)
        w = jnp.einsum("nhwk,nk->nhw", one_hot, inv)
    else:
        w = jnp.ones(fg.shape, jnp.float32)
    return jnp.where(fg == 0, 0.0, w)


def _reference(x, target, fg_mask, *, weighted, num_fg_classes):
    logp = jax.nn.log_softmax(x.astype(jnp.float32), axis=1)
    ce = -jnp.take_along_axis(logp, target[:, None].astype(jnp.int32), axis=1)[:, 0]
    w = _generate_weight_mask_ref(fg_mask, weighted=weighted,
                                  num_classes=num_fg_classes)
    return jnp.sum(ce * w) / jnp.sum(w)


if __name__ == "__main__":
    key = jax.random.PRNGKey(0)
    kx, kt, kf = jax.random.split(key, 3)

    # batch=2, channels(classes)=4, spatial 16x16
    N, C, H, W = 2, 4, 16, 16
    NUM_FG_CLASSES = 3            # fg_mask labels in {0 (ignored), 1, 2}

    x = jax.random.normal(kx, (N, C, H, W), dtype=jnp.float32)
    target = jax.random.randint(kt, (N, H, W), 0, C, dtype=jnp.int32)
    fg_mask = jax.random.randint(kf, (N, H, W), 0, NUM_FG_CLASSES, dtype=jnp.int32)

    # weighted path (fused in-kernel weight mask via SMEM table)
    loss_w = ce_loss_weighted_masked(x, target, fg_mask, weighted=True,
                                     num_fg_classes=NUM_FG_CLASSES)
    loss_w = jax.block_until_ready(loss_w)
    ref_w = _reference(x, target, fg_mask, weighted=True,
                       num_fg_classes=NUM_FG_CLASSES)
    assert jnp.allclose(loss_w, ref_w, rtol=1e-4, atol=1e-5), (loss_w, ref_w)

    # unweighted path (weight = [fg != 0])
    loss_u = ce_loss_weighted_masked(x, target, fg_mask, weighted=False)
    loss_u = jax.block_until_ready(loss_u)
    ref_u = _reference(x, target, fg_mask, weighted=False,
                       num_fg_classes=NUM_FG_CLASSES)
    assert jnp.allclose(loss_u, ref_u, rtol=1e-4, atol=1e-5), (loss_u, ref_u)

    # odd spatial size exercises the native-layout (no-reshape) fallback path
    H2, W2 = 12, 12
    x2 = jax.random.normal(kx, (N, C, H2, W2), dtype=jnp.float32)
    t2 = jax.random.randint(kt, (N, H2, W2), 0, C, dtype=jnp.int32)
    f2 = jax.random.randint(kf, (N, H2, W2), 0, NUM_FG_CLASSES, dtype=jnp.int32)
    loss_o = jax.block_until_ready(
        ce_loss_weighted_masked(x2, t2, f2, weighted=True,
                                num_fg_classes=NUM_FG_CLASSES))
    ref_o = _reference(x2, t2, f2, weighted=True, num_fg_classes=NUM_FG_CLASSES)
    assert jnp.allclose(loss_o, ref_o, rtol=1e-4, atol=1e-5), (loss_o, ref_o)

    print("KERNEL_OK")
</pallas_src>

<mosaic_0001>
module attributes {stable_mosaic.version = 11 : i64} {
  func.func @_ce_loss_kernel(%arg0: i32, %arg1: i32, %arg2: memref<1x4x2x128xf32, #tpu.memory_space<vmem>>, %arg3: memref<1x2x128xi32, #tpu.memory_space<vmem>>, %arg4: memref<1x2x128xi32, #tpu.memory_space<vmem>>, %arg5: memref<2x3xf32, #tpu.memory_space<smem>>, %arg6: memref<1x2x128xf32, #tpu.memory_space<vmem>>) attributes {dimension_semantics = [#tpu.dimension_semantics<parallel>, #tpu.dimension_semantics<arbitrary>], iteration_bounds = array<i64: 2, 1>, scalar_prefetch = 0 : i64, scratch_operands = 0 : i64, tpu.core_type = #tpu.core_type<tc>, window_params = [{transform_indices = @transform_0, window_bounds = array<i64: 1, 4, 2, 128>}, {transform_indices = @transform_1, window_bounds = array<i64: 1, 2, 128>}, {transform_indices = @transform_2, window_bounds = array<i64: 1, 2, 128>}, {transform_indices = @transform_3, window_bounds = array<i64: 2, 3>}, {transform_indices = @transform_4, window_bounds = array<i64: 1, 2, 128>}]} {
    %c0_i32 = arith.constant 0 : i32
    %0 = arith.cmpi eq, %arg1, %c0_i32 : i32
    %1 = arith.extui %0 : i1 to i32
    %c0_i32_0 = arith.constant 0 : i32
    %2 = arith.cmpi ne, %1, %c0_i32_0 : i32
    scf.if %2 {
      %cst_54 = arith.constant 0.000000e+00 : f32
      %82 = vector.broadcast %cst_54 : f32 to vector<1x2x128xf32>
      %c0_55 = arith.constant 0 : index
      %c0_56 = arith.constant 0 : index
      %c0_57 = arith.constant 0 : index
      %83 = vector.load %arg6[%c0_55, %c0_56, %c0_57] : memref<1x2x128xf32, #tpu.memory_space<vmem>>, vector<1x2x128xf32>
      tpu.vector_store %arg6[%c0_55, %c0_56, %c0_57], %82 {strides = array<i32>} : memref<1x2x128xf32, #tpu.memory_space<vmem>>, vector<1x2x128xf32>,
    } else {
    }
    %c0 = arith.constant 0 : index
    %c0_1 = arith.constant 0 : index
    %c0_2 = arith.constant 0 : index
    %3 = vector.load %arg3[%c0, %c0_1, %c0_2] : memref<1x2x128xi32, #tpu.memory_space<vmem>>, vector<1x2x128xi32>
    %c0_3 = arith.constant 0 : index
    %c0_4 = arith.constant 0 : index
    %c0_5 = arith.constant 0 : index
    %4 = vector.load %arg4[%c0_3, %c0_4, %c0_5] : memref<1x2x128xi32, #tpu.memory_space<vmem>>, vector<1x2x128xi32>
    %c0_6 = arith.constant 0 : index
    %c0_7 = arith.constant 0 : index
    %c0_8 = arith.constant 0 : index
    %c0_9 = arith.constant 0 : index
    %5 = vector.load %arg2[%c0_6, %c0_7, %c0_8, %c0_9] : memref<1x4x2x128xf32, #tpu.memory_space<vmem>>, vector<1x1x2x128xf32>
    %6 = vector.shape_cast %5 : vector<1x1x2x128xf32> to vector<1x2x128xf32>
    %c0_10 = arith.constant 0 : index
    %c1 = arith.constant 1 : index
    %c0_11 = arith.constant 0 : index
    %c0_12 = arith.constant 0 : index
    %7 = vector.load %arg2[%c0_10, %c1, %c0_11, %c0_12] : memref<1x4x2x128xf32, #tpu.memory_space<vmem>>, vector<1x1x2x128xf32>
    %8 = vector.shape_cast %7 : vector<1x1x2x128xf32> to vector<1x2x128xf32>
    %9 = arith.maximumf %6, %8 : vector<1x2x128xf32>
    %c0_13 = arith.constant 0 : index
    %c2 = arith.constant 2 : index
    %c0_14 = arith.constant 0 : index
    %c0_15 = arith.constant 0 : index
    %10 = vector.load %arg2[%c0_13, %c2, %c0_14, %c0_15] : memref<1x4x2x128xf32, #tpu.memory_space<vmem>>, vector<1x1x2x128xf32>
    %11 = vector.shape_cast %10 : vector<1x1x2x128xf32> to vector<1x2x128xf32>
    %12 = arith.maximumf %9, %11 : vector<1x2x128xf32>
    %c0_16 = arith.constant 0 : index
    %c3 = arith.constant 3 : index
    %c0_17 = arith.constant 0 : index
    %c0_18 = arith.constant 0 : index
    %13 = vector.load %arg2[%c0_16, %c3, %c0_17, %c0_18] : memref<1x4x2x128xf32, #tpu.memory_space<vmem>>, vector<1x1x2x128xf32>
    %14 = vector.shape_cast %13 : vector<1x1x2x128xf32> to vector<1x2x128xf32>
    %15 = arith.maximumf %12, %14 : vector<1x2x128xf32>
    %cst = arith.constant 0.000000e+00 : f32
    %16 = vector.broadcast %cst : f32 to vector<1x2x128xf32>
    %cst_19 = arith.constant 0.000000e+00 : f32
    %17 = vector.broadcast %cst_19 : f32 to vector<1x2x128xf32>
    %c0_20 = arith.constant 0 : index
    %c0_21 = arith.constant 0 : index
    %c0_22 = arith.constant 0 : index
    %c0_23 = arith.constant 0 : index
    %18 = vector.load %arg2[%c0_20, %c0_21, %c0_22, %c0_23] : memref<1x4x2x128xf32, #tpu.memory_space<vmem>>, vector<1x1x2x128xf32>
    %19 = vector.shape_cast %18 : vector<1x1x2x128xf32> to vector<1x2x128xf32>
    %20 = arith.subf %19, %15 : vector<1x2x128xf32>
    %21 = math.exp %20 : vector<1x2x128xf32>
    %22 = arith.addf %16, %21 : vector<1x2x128xf32>
    %c0_i32_24 = arith.constant 0 : i32
    %23 = vector.broadcast %c0_i32_24 : i32 to vector<1x2x128xi32>
    %24 = arith.cmpi eq, %3, %23 : vector<1x2x128xi32>
    %cst_25 = arith.constant 0.000000e+00 : f32
    %25 = vector.broadcast %cst_25 : f32 to vector<1x2x128xf32>
    %26 = arith.select %24, %19, %25 : vector<1x2x128xi1>, vector<1x2x128xf32>
    %27 = arith.addf %17, %26 : vector<1x2x128xf32>
    %c0_26 = arith.constant 0 : index
    %c1_27 = arith.constant 1 : index
    %c0_28 = arith.constant 0 : index
    %c0_29 = arith.constant 0 : index
    %28 = vector.load %arg2[%c0_26, %c1_27, %c0_28, %c0_29] : memref<1x4x2x128xf32, #tpu.memory_space<vmem>>, vector<1x1x2x128xf32>
    %29 = vector.shape_cast %28 : vector<1x1x2x128xf32> to vector<1x2x128xf32>
    %30 = arith.subf %29, %15 : vector<1x2x128xf32>
    %31 = math.exp %30 : vector<1x2x128xf32>
    %32 = arith.addf %22, %31 : vector<1x2x128xf32>
    %c1_i32 = arith.constant 1 : i32
    %33 = vector.broadcast %c1_i32 : i32 to vector<1x2x128xi32>
    %34 = arith.cmpi eq, %3, %33 : vector<1x2x128xi32>
    %cst_30 = arith.constant 0.000000e+00 : f32
    %35 = vector.broadcast %cst_30 : f32 to vector<1x2x128xf32>
    %36 = arith.select %34, %29, %35 : vector<1x2x128xi1>, vector<1x2x128xf32>
    %37 = arith.addf %27, %36 : vector<1x2x128xf32>
    %c0_31 = arith.constant 0 : index
    %c2_32 = arith.constant 2 : index
    %c0_33 = arith.constant 0 : index
    %c0_34 = arith.constant 0 : index
    %38 = vector.load %arg2[%c0_31, %c2_32, %c0_33, %c0_34] : memref<1x4x2x128xf32, #tpu.memory_space<vmem>>, vector<1x1x2x128xf32>
    %39 = vector.shape_cast %38 : vector<1x1x2x128xf32> to vector<1x2x128xf32>
    %40 = arith.subf %39, %15 : vector<1x2x128xf32>
    %41 = math.exp %40 : vector<1x2x128xf32>
    %42 = arith.addf %32, %41 : vector<1x2x128xf32>
    %c2_i32 = arith.constant 2 : i32
    %43 = vector.broadcast %c2_i32 : i32 to vector<1x2x128xi32>
    %44 = arith.cmpi eq, %3, %43 : vector<1x2x128xi32>
    %cst_35 = arith.constant 0.000000e+00 : f32
    %45 = vector.broadcast %cst_35 : f32 to vector<1x2x128xf32>
    %46 = arith.select %44, %39, %45 : vector<1x2x128xi1>, vector<1x2x128xf32>
    %47 = arith.addf %37, %46 : vector<1x2x128xf32>
    %c0_36 = arith.constant 0 : index
    %c3_37 = arith.constant 3 : index
    %c0_38 = arith.constant 0 : index
    %c0_39 = arith.constant 0 : index
    %48 = vector.load %arg2[%c0_36, %c3_37, %c0_38, %c0_39] : memref<1x4x2x128xf32, #tpu.memory_space<vmem>>, vector<1x1x2x128xf32>
    %49 = vector.shape_cast %48 : vector<1x1x2x128xf32> to vector<1x2x128xf32>
    %50 = arith.subf %49, %15 : vector<1x2x128xf32>
    %51 = math.exp %50 : vector<1x2x128xf32>
    %52 = arith.addf %42, %51 : vector<1x2x128xf32>
    %c3_i32 = arith.constant 3 : i32
    %53 = vector.broadcast %c3_i32 : i32 to vector<1x2x128xi32>
    %54 = arith.cmpi eq, %3, %53 : vector<1x2x128xi32>
    %cst_40 = arith.constant 0.000000e+00 : f32
    %55 = vector.broadcast %cst_40 : f32 to vector<1x2x128xf32>
    %56 = arith.select %54, %49, %55 : vector<1x2x128xi1>, vector<1x2x128xf32>
    %57 = arith.addf %47, %56 : vector<1x2x128xf32>
    %58 = math.log %52 : vector<1x2x128xf32>
    %59 = arith.addf %15, %58 : vector<1x2x128xf32>
    %60 = arith.subf %59, %57 : vector<1x2x128xf32>
    %cst_41 = arith.constant 0.000000e+00 : f32
    %61 = vector.broadcast %cst_41 : f32 to vector<1x2x128xf32>
    %c1_i32_42 = arith.constant 1 : i32
    %62 = vector.broadcast %c1_i32_42 : i32 to vector<1x2x128xi32>
    %63 = arith.cmpi eq, %4, %62 : vector<1x2x128xi32>
    %64 = arith.index_cast %arg0 : i32 to index
    %c1_43 = arith.constant 1 : index
    %65 = memref.load %arg5[%64, %c1_43] : memref<2x3xf32, #tpu.memory_space<smem>>
    %cst_44 = arith.constant 0.000000e+00 : f32
    %66 = vector.broadcast %65 : f32 to vector<1x2x128xf32>
    %67 = vector.broadcast %cst_44 : f32 to vector<1x2x128xf32>
    %68 = arith.select %63, %66, %67 : vector<1x2x128xi1>, vector<1x2x128xf32>
    %69 = arith.addf %61, %68 : vector<1x2x128xf32>
    %c2_i32_45 = arith.constant 2 : i32
    %70 = vector.broadcast %c2_i32_45 : i32 to vector<1x2x128xi32>
    %71 = arith.cmpi eq, %4, %70 : vector<1x2x128xi32>
    %72 = arith.index_cast %arg0 : i32 to index
    %c2_46 = arith.constant 2 : index
    %73 = memref.load %arg5[%72, %c2_46] : memref<2x3xf32, #tpu.memory_space<smem>>
    %cst_47 = arith.constant 0.000000e+00 : f32
    %74 = vector.broadcast %73 : f32 to vector<1x2x128xf32>
    %75 = vector.broadcast %cst_47 : f32 to vector<1x2x128xf32>
    %76 = arith.select %71, %74, %75 : vector<1x2x128xi1>, vector<1x2x128xf32>
    %77 = arith.addf %69, %76 : vector<1x2x128xf32>
    %78 = arith.mulf %77, %60 : vector<1x2x128xf32>
    %c0_48 = arith.constant 0 : index
    %c0_49 = arith.constant 0 : index
    %c0_50 = arith.constant 0 : index
    %79 = vector.load %arg6[%c0_48, %c0_49, %c0_50] : memref<1x2x128xf32, #tpu.memory_space<vmem>>, vector<1x2x128xf32>
    %80 = arith.addf %79, %78 : vector<1x2x128xf32>
    %c0_51 = arith.constant 0 : index
    %c0_52 = arith.constant 0 : index
    %c0_53 = arith.constant 0 : index
    %81 = vector.load %arg6[%c0_51, %c0_52, %c0_53] : memref<1x2x128xf32, #tpu.memory_space<vmem>>, vector<1x2x128xf32>
    tpu.vector_store %arg6[%c0_51, %c0_52, %c0_53], %80 {strides = array<i32>} : memref<1x2x128xf32, #tpu.memory_space<vmem>>, vector<1x2x128xf32>,
    return
  }
  func.func @transform_0(%arg0: i32, %arg1: i32) -> (i32, i32, i32, i32) {
    %c0_i32 = arith.constant 0 : i32
    %c0_i32_0 = arith.constant 0 : i32
    %c0_i32_1 = arith.constant 0 : i32
    return %arg0, %c0_i32, %arg1, %c0_i32_0 : i32, i32, i32, i32
  }
  func.func @transform_1(%arg0: i32, %arg1: i32) -> (i32, i32, i32) {
    %c0_i32 = arith.constant 0 : i32
    %c0_i32_0 = arith.constant 0 : i32
    return %arg0, %arg1, %c0_i32 : i32, i32, i32
  }
  func.func @transform_2(%arg0: i32, %arg1: i32) -> (i32, i32, i32) {
    %c0_i32 = arith.constant 0 : i32
    %c0_i32_0 = arith.constant 0 : i32
    return %arg0, %arg1, %c0_i32 : i32, i32, i32
  }
  func.func @transform_3(%arg0: i32, %arg1: i32) -> (i32, i32) {
    %c0_i32 = arith.constant 0 : i32
    %c0_i32_0 = arith.constant 0 : i32
    %c0_i32_1 = arith.constant 0 : i32
    return %c0_i32, %c0_i32_0 : i32, i32
  }
  func.func @transform_4(%arg0: i32, %arg1: i32) -> (i32, i32, i32) {
    %c0_i32 = arith.constant 0 : i32
    %c0_i32_0 = arith.constant 0 : i32
    %c0_i32_1 = arith.constant 0 : i32
    return %arg0, %c0_i32, %c0_i32_0 : i32, i32, i32
  }
}

</mosaic_0001>

<bundles_post_ra>
// kernel: tpu_custom_call.1
= control target key start
LH: loop header
LB: loop body
LE: loop exit
PB: predicated region body
PF: predicated region fallthrough
CT: control target
= control target key end

     0   :  { %s1100_s0 = inlined_call_operand.hbm [shape: f32[2,4,2,128], index: 0, kind: input, shape index: {}]   ;;  %s1101_s1 = inlined_call_operand.hbm [shape: s32[2,2,128], index: 1, kind: input, shape index: {}]   ;;  %s1102_s2 = inlined_call_operand.vmem [shape: s32[2,2,128], index: 2, kind: input, shape index: {}]   ;;  %s1103_s3 = inlined_call_operand.vmem [shape: f32[2,3], index: 3, kind: input, shape index: {}]   ;;  %s1104_s4 = inlined_call_operand.hbm [shape: f32[2,2,128], index: 4, kind: output, shape index: {}]  }
   0x1   :  { %1111 = sst [smem:[#allocation15_spill]] %s1100_s0 }
   0x2   :  { %1112 = sst [smem:[#allocation16_spill]] %s1103_s3 }
   0x3   :  { %9 = vsyncpa [#allocation3], 0 }
   0x4   :  { %11 = vsyncpa [#allocation3 + $0x1], 0 }
   0x5   :  { %12 = vsyncpa [#allocation7], 0 }
   0x6   :  { %14 = vsyncpa [#allocation7 + $0x1], 0 }
   0x7   :  { %15 = vsyncpa [#allocation5], 0 }
   0x8   :  { %16 = vsyncpa [#allocation4], 0 }
   0x9   :  { %18 = vsyncpa [#allocation4 + $0x1], 0  ;;  %s839_s15 = smov 0   ;;  %s841_s16 = smov 0  }
   0xa   :  { %s843_s17 = smov 0   ;;  %s845_s18 = smov 0  }
   0xb   :  { %s847_s19 = smov 0   ;;  %s849_s20 = smov 0  }
   0xc LB: > { %s524_s21 = sadd.s32 4294967295, %s805_s20   ;;  %s525_s22 = sadd.s32 4294967294, %s805_s20   ;;  %s805_s20 = sphi %s849_s20, %s24_s20   ;;  %s801_s19 = sphi %s847_s19, %s1136_s19   ;;  %s797_s18 = sphi %s845_s18, %s1135_s18   ;;  %s793_s17 = sphi %s843_s17, %s1134_s17   ;;  %s789_s16 = sphi %s841_s16, %s1133_s16   ;;  %s785_s15 = sphi %s839_s15, %s1132_s15  }
   0xd   : > { %s45_s23 = sadd.s32 1, %s793_s17  ;;  %p52_p0 = scmp.ne.s32.totalorder %s793_s17, %s789_s16 }
   0xe   : > { %p53_p1 = scmp.eq.s32.totalorder %s805_s20, 0  ;;  %p58_p2 = scmp.ne.s32.totalorder %s789_s16, %s785_s15 }
   0xf   : > { %p877_p3 = scmp.eq.s32.totalorder %s524_s21, 0  ;;  %p159_p4 = scmp.eq.s32.totalorder %s524_s21, 1 }
  0x10   : > { %p881_p5 = por %p53_p1, %p52_p0  ;;  %p165_p6 = scmp.eq.s32.totalorder %s525_s22, 1 }
  0x11   : > { %s1113_s24 = scalar_select %p877_p3, 1, 0 }
  0x12   : > { %p887_p7 = por %p877_p3, %p58_p2  ;;  %p891_p8 = por %p159_p4, %p52_p0 }
  0x13   : > { %p895_p9 = por %p165_p6, %p58_p2  ;;  %p526_p10 = scmp.ge.s32.totalorder %s805_s20, 1 }
  0x14   : > { %s1115_s26 = scalar_select %p887_p7, 1, 0 }
  0x15   : > { %s1116_s27 = scalar_select %p891_p8, 1, 0 }
  0x16   : > { %s1117_s28 = scalar_select %p895_p9, 1, 0 }
  0x17   : > { %p172_p11 = scmp.lt.s32.totalorder %s805_s20, 3  ;;  %s1118_s3 = sld [smem:[#allocation16_spill]] }
  0x18   : > { %p575_p0 = scmp.lt.s32.totalorder %s805_s20, 2  ;;  %s36_s9 = sadd.s32 1, %s801_s19 }
  0x19   : > { %p904_p12 = pnand %p526_p10, %p172_p11  ;;  %p925_p6 = scmp.ge.s32.totalorder %s36_s9, 2 }
  0x1a   : > { %p914_p2 = pnand %p575_p0, %p881_p5  ;;  %s930_s11 = sand.u32 1, %s793_s17  }
  0x1b   : > { %s1119_s6 = scalar_select %p904_p12, 1, 0 }
  0x1c   : > { %p559_p1 = pneg %p904_p12 }
  0x1d   : > { %s185_s5 = sshll.u32 %s1118_s3, 4  ;;  %s186_s5 = int_to_ptr.vmem [resolvable:$true] %s185_s5 }
  0x1e   : > { %p920_p4 = pnand %p559_p1, %p877_p3  ;;  %s640_s12 = scalar_lea.vmem %s186_s5, 32 }
  0x1f   : > { %p641_p10 = scmp.ne.s32.totalorder %s186_s5, %s640_s12  ;;  %p648_p13 = scmp.lt.s32.totalorder %s186_s5, %s186_s5 }
  0x20   : > { %p642_p5 = pneg %p920_p4  ;;  %p649_p9 = scmp.lt.s32.totalorder %s640_s12, %s640_s12 }
  0x22   : > { %p643_p11 = pnand %p642_p5, %p641_p10  ;;  %p650_p1 = por %p649_p9, %p648_p13 }
  0x24   : > { %p644_p0 = pneg %p643_p11 }
  0x26   : > { %p651_p8 = pnand %p650_p1, %p644_p0 }
  0x28   : > { %654 = shalt.err (!%p651_p8)
}
  0x29   : > { %s807_s13 = smov [#allocation8]   ;;  %s1138_s9 = smov (%p925_p6, %s36_s9), 0 }
  0x2a   : > { %562 = dma.vmem_to_smem (!%p920_p4), %s186_s5, 32, %s807_s13, [#allocation5]  }
  0x2b   : > { %1123 = sst [smem:[#allocation14_spill]] %s1138_s9  ;;  %s529_s14 = sshll.u32 %s930_s11, 3 }
  0x2c   : > { %s40_s21 = ssub.s32 %s801_s19, %s1138_s9  ;;  %s548_s22 = sshll.u32 %s801_s19, 7 }
  0x2d   : > { %p43_p8 = scmp.eq.s32.totalorder %s40_s21, 0  ;;  %s1124_s0 = sld [smem:[#allocation15_spill]] }
  0x2e   : > { %s200_s8 = scalar_lea.vmem [#allocation2], %s529_s14  ;;  %s197_s10 = scalar_lea.sflag [#allocation3], %s930_s11 }
  0x2f   : > { %s208_s12 = sshll.u32 %s200_s8, 4  ;;  %p657_p13 = pneg %p914_p2  ;;  %s954_s12 = int_to_ptr.vmem [resolvable:$true] %s208_s12 }
  0x30   : > { %s952_s5 = scalar_select %p43_p8, %s793_s17, %s45_s23  }
  0x33   : > { %s947_s30 = scalar_lea.hbm %s1124_s0, %s548_s22  ;;  %s660_s25 = scalar_lea.hbm %s1124_s0, 256 }
  0x34   : > { %s655_s13 = scalar_lea.hbm %s947_s30, 128  ;;  %p661_p10 = scmp.lt.u32.totalorder %s947_s30, %s1124_s0 }
  0x35   : > { %p656_p9 = scmp.ne.s32.totalorder %s947_s30, %s655_s13  ;;  %p662_p5 = scmp.lt.u32.totalorder %s660_s25, %s655_s13 }
  0x36   : > { %p664_p0 = scmp.lt.u32.totalorder %s655_s13, %s947_s30 }
  0x37   : > { %p658_p4 = pnand %p657_p13, %p656_p9  ;;  %p663_p11 = por %p662_p5, %p661_p10 }
  0x39   : > { %p659_p6 = pneg %p658_p4  ;;  %p665_p1 = por %p664_p0, %p663_p11 }
  0x3b   : > { %p666_p8 = pnand %p665_p1, %p659_p6 }
  0x3d   : > { %669 = shalt.err (!%p666_p8)
}
  0x3e   : > { %s670_s23 = scalar_lea.vmem %s954_s12, 128  ;;  %s808_s8 = smov [#allocation2]  }
  0x3f   : > { %p671_p9 = scmp.ne.s32.totalorder %s954_s12, %s670_s23  ;;  %s675_s21 = sshll.u32 %s808_s8, 4  ;;  %s676_s21 = int_to_ptr.vmem [resolvable:$false] %s675_s21 }
  0x40   : > { %s677_s22 = scalar_lea.vmem %s676_s21, 256  ;;  %p678_p7 = scmp.lt.s32.totalorder %s954_s12, %s676_s21 }
  0x41   : > { %p673_p4 = pnand %p671_p9, %p657_p13  ;;  %p679_p10 = scmp.lt.s32.totalorder %s677_s22, %s670_s23 }
  0x43   : > { %p674_p3 = pneg %p673_p4  ;;  %p680_p5 = por %p679_p10, %p678_p7 }
  0x45   : > { %p681_p11 = pnand %p680_p5, %p674_p3 }
  0x47   : > { %684 = shalt.err (!%p681_p11)
}
  0x48   : > { %s809_s13 = smov 32   ;;  %s810_s25 = smov 2  }
  0x49   : > { %566 = dma.hbm_to_vmem [thread:$0]  (!%p914_p2), %s947_s30, 128, %s954_s12, %s197_s10, %s809_s13, %s809_s13, %s810_s25  }
  0x4a   : > { %s532_s14 = sshll.u32 %s930_s11, 1  ;;  %s533_s29 = sshll.u32 %s801_s19, 5 }
  0x4b   : > { %s989_s21 = scalar_lea.hbm %s1101_s1, %s533_s29  ;;  %s222_s22 = scalar_lea.vmem [#allocation6], %s532_s14 }
  0x4c   : > { %s230_s0 = sshll.u32 %s222_s22, 4  ;;  %s219_s3 = scalar_lea.sflag [#allocation7], %s930_s11  ;;  %s231_s0 = int_to_ptr.vmem [resolvable:$true] %s230_s0 }
  0x4d   : > { %s685_s9 = scalar_lea.hbm %s989_s21, 32  ;;  %s690_s10 = scalar_lea.hbm %s1101_s1, 64 }
  0x4e   : > { %p686_p3 = scmp.ne.s32.totalorder %s989_s21, %s685_s9  ;;  %p691_p0 = scmp.lt.u32.totalorder %s989_s21, %s1101_s1 }
  0x4f   : > { %p692_p1 = scmp.lt.u32.totalorder %s690_s10, %s685_s9  ;;  %p694_p9 = scmp.lt.u32.totalorder %s685_s9, %s989_s21 }
  0x50   : > { %p688_p7 = pnand %p686_p3, %p657_p13 }
  0x51   : > { %p693_p8 = por %p692_p1, %p691_p0 }
  0x52   : > { %p689_p6 = pneg %p688_p7 }
  0x53   : > { %p695_p4 = por %p694_p9, %p693_p8 }
  0x55   : > { %p696_p10 = pnand %p695_p4, %p689_p6 }
  0x57   : > { %699 = shalt.err (!%p696_p10)
}
  0x58   : > { %s700_s11 = scalar_lea.vmem %s231_s0, 32  ;;  %s811_s14 = smov [#allocation6]  }
  0x59   : > { %p701_p5 = scmp.ne.s32.totalorder %s231_s0, %s700_s11  ;;  %s705_s29 = sshll.u32 %s811_s14, 4  ;;  %s706_s29 = int_to_ptr.vmem [resolvable:$false] %s705_s29 }
  0x5a   : > { %s707_s8 = scalar_lea.vmem %s706_s29, 64  ;;  %p708_p7 = scmp.lt.s32.totalorder %s231_s0, %s706_s29 }
  0x5b   : > { %p703_p11 = pnand %p701_p5, %p657_p13  ;;  %p709_p12 = scmp.lt.s32.totalorder %s707_s8, %s700_s11 }
  0x5d   : > { %p704_p3 = pneg %p703_p11  ;;  %p710_p0 = por %p709_p12, %p708_p7 }
  0x5f   : > { %p711_p1 = pnand %p710_p0, %p704_p3 }
  0x61   : > { %714 = shalt.err (!%p711_p1)
}
  0x62   : > { %569 = dma.hbm_to_vmem [thread:$0]  (!%p914_p2), %s989_s21, 32, %s231_s0, %s219_s3  }
  0x63   : > { %p1125_p6 = scmp.ne.s32.totalorder %s1119_s6, 0 }
  0x64   : > { %s1014_s9 = sand.u32 (!%p1125_p6), 1, %s789_s16   ;;  %p1126_p13 = scmp.ne.s32.totalorder (!%p1125_p6), %s1115_s26, 0 }
  0x65   : > { %249 = sbr.rel (%p1125_p6) target bundleno = 181 (0xb5), region = 36  ;;  %s535_s23 = sshll.u32 (!%p1125_p6), %s1014_s9, 3 }
  0x66   : > { %s252_s22 = scalar_lea.sflag (!%p1125_p6), [#allocation3], %s1014_s9  ;;  %s255_s30 = scalar_lea.vmem (!%p1125_p6), [#allocation2], %s535_s23 }
  0x6c   : > { %768 = dma.done.wait (%p1126_p13), %s252_s22, 128  }
  0x6d   : > { %770 = vsyncadd (%p1126_p13), %s252_s22, 4294967168  ;;  %s536_s0 = sshll.u32 %s1014_s9, 1  ;;  %s261_s3 = scalar_lea.sflag [#allocation7], %s1014_s9 }
  0x6e   : > { %s1024_s6 = scalar_lea.vmem [#allocation6], %s536_s0 }
  0x6f   : > { %772 = dma.done.wait (%p1126_p13), %s261_s3, 32  }
  0x70   : > { %774 = vsyncadd (%p1126_p13), %s261_s3, 4294967264  ;;  %p1127_p12 = scmp.ne.s32.totalorder %s1113_s24, 0 }
  0x72   : > { %776 = dma.done.wait (%p1127_p12), [#allocation5], 32  }
  0x73   : > { %778 = vsyncadd (%p1127_p12), [#allocation5], 4294967264 }
  0x74   : > { %273 = sfence }
  0x75   : > { %s1034_s7 = scalar_lea.vmem [#allocation9], %s536_s0  ;;  %v812_v0 = vmov 0.0   ;;  %v320_v1 = vld [vmem:[%s255_s30] sm:$0x3]  ;;  %v540_v2 = vld [vmem:[%s255_s30 + $0x2] sm:$0x3] }
  0x76   : > { %317 = vst [vmem:[%s1034_s7] sm:$0x3] %v812_v0  ;;  %v541_v3 = vld [vmem:[%s255_s30 + $0x4] sm:$0x3]  ;;  %v323_v4 = vmax.f32 %v320_v1, %v540_v2  ;;  %v542_v5 = vld [vmem:[%s255_s30 + $0x6] sm:$0x3]  ;;  %p306_p2 = scmp.lt.s32.totalorder %s797_s18, 1 }
  0x77   : > { %v318_v18 = vld [vmem:[%s1024_s6] sm:$0x3]  ;;  %s543_s24 = sshll.u32 %s797_s18, 7  ;;  %s545_s8 = sshll.u32 %s797_s18, 5 }
  0x78   : > { %v326_v6 = vmax.f32 %v323_v4, %v541_v3  ;;  %s307_s26 = scalar_select %p306_p2, %s797_s18, 1  ;;  %vm334_vm0 = vcmp.eq.s32.totalorder %v318_v18, 0  ;;  %vm341_vm1 = vcmp.eq.s32.totalorder %v318_v18, 1  ;;  %vm348_vm2 = vcmp.eq.s32.totalorder %v318_v18, 2 }
  0x79   : > { %s364_s21 = sadd.s32 1, %s543_s24  ;;  %s370_s12 = sadd.s32 2, %s543_s24  ;;  %v335_v24 = vsel %vm334_vm0, %v320_v1, 0.0  ;;  %v342_v25 = vsel %vm341_vm1, %v540_v2, 0.0  ;;  %v349_v27 = vsel %vm348_vm2, %v541_v3, 0.0  ;;  %vm355_vm3 = vcmp.eq.s32.totalorder %v318_v18, 3 }
  0x7a   : > { %v329_v7 = vmax.f32 %v326_v6, %v542_v5  ;;  %s539_s10 = sshll.u32 %s307_s26, 1  ;;  %s365_s13 = sld [smem:[#allocation8 + %s364_s21]]  ;;  %v343_v26 = vadd.f32 %v342_v25, %v335_v24  ;;  %v356_v32 = vsel %vm355_vm3, %v542_v5, 0.0 }
  0x7b   : > { %s371_s25 = sld [smem:[#allocation8 + %s370_s12]]  ;;  %s312_s29 = scalar_lea.vmem %s1102_s2, %s539_s10 }
  0x7c   : > { %v330_v8 = vsub.f32 %v320_v1, %v329_v7  ;;  %v337_v9 = vsub.f32 %v540_v2, %v329_v7  ;;  %v344_v10 = vsub.f32 %v541_v3, %v329_v7  ;;  %v351_v11 = vsub.f32 %v542_v5, %v329_v7  ;;  %v319_v28 = vld [vmem:[%s312_s29] sm:$0x3]  ;;  %s393_s23 = sshll.u32 %s1034_s7, 4  ;;  %s1050_s0 = scalar_lea.hbm %s1104_s4, %s545_s8  ;;  %s1052_s23 = int_to_ptr.vmem [resolvable:$true] %s393_s23 }
  0x7d   : > { %v350_v29 = vadd.f32 %v349_v27, %v343_v26  ;;  %vm362_vm4 = vcmp.eq.s32.totalorder %v319_v28, 1  ;;  %vm369_vm5 = vcmp.eq.s32.totalorder %v319_v28, 2  ;;  %v376_v41 = vld [vmem:[%s1034_s7] sm:$0x3]  ;;  %s380_s3 = scalar_lea.sflag [#allocation4], %s1014_s9  ;;  %s715_s6 = scalar_lea.vmem %s1052_s23, 32 }
  0x7e   : > { %v331_v12 = vmul.f32 1.442695, %v330_v8  ;;  %v338_v13 = vmul.f32 1.442695, %v337_v9  ;;  %v345_v14 = vmul.f32 1.442695, %v344_v10  ;;  %p716_p8 = scmp.ne.s32.totalorder %s1052_s23, %s715_s6 }
  0x7f   : > { %v352_v15 = vmul.f32 1.442695, %v351_v11  ;;  %v357_v36 = vadd.f32 %v356_v32, %v350_v29  ;;  %p1128_p9 = scmp.ne.s32.totalorder %s1116_s27, 0  ;;  %s813_s18 = smov [#allocation9]  }
  0x80   : > { %630 = vpow2.f32 %v331_v12  ;;  %v366_v30 = vstv %s365_s13  ;;  %s719_s24 = sshll.u32 %s813_s18, 4  ;;  %s720_s24 = int_to_ptr.vmem [resolvable:$false] %s719_s24 }
  0x81   : > { %632 = vpow2.f32 %v338_v13  ;;  %v372_v31 = vstv %s371_s25  ;;  %v367_v34 = vsel %vm362_vm4, %v366_v30, 0.0  ;;  %p717_p4 = pnand %p716_p8, %p1128_p9  ;;  %s721_s26 = scalar_lea.vmem %s720_s24, 64 }
  0x82   : > { %634 = vpow2.f32 %v345_v14  ;;  %v373_v35 = vsel %vm369_vm5, %v372_v31, 0.0  ;;  %p722_p5 = scmp.lt.s32.totalorder %s1052_s23, %s720_s24  ;;  %p723_p11 = scmp.lt.s32.totalorder %s721_s26, %s715_s6 }
  0x83   : > { %636 = vpow2.f32 %v352_v15  ;;  %v374_v39 = vadd.f32 %v373_v35, %v367_v34  ;;  %p718_p10 = pneg %p717_p4 }
  0x84   : > { %p724_p3 = por %p723_p11, %p722_p5 }
  0x86   : > { %p725_p7 = pnand %p724_p3, %p718_p10 }
  0x8a   : > { %v631_v16 = vpop.eup %630 }
  0x8b   : > { %v633_v17 = vpop.eup %632 }
  0x8c   : > { %v635_v19 = vpop.eup %634  ;;  %v340_v20 = vadd.f32 %v633_v17, %v631_v16 }
  0x8d   : > { %v637_v21 = vpop.eup %636 }
  0x8e   : > { %v347_v22 = vadd.f32 %v635_v19, %v340_v20 }
  0x90   : > { %v354_v23 = vadd.f32 %v637_v21, %v347_v22 }
  0x92   : > { %638 = vlog2.f32 %v354_v23 }
  0x9c   : > { %v639_v33 = vpop.eup %638 }
  0x9d   : > { %v359_v37 = vmul.f32 0.6931472, %v639_v33 }
  0x9f   : > { %v360_v38 = vadd.f32 %v359_v37, %v329_v7 }
  0xa1   : > { %v361_v40 = vsub.f32 %v360_v38, %v357_v36 }
  0xa3   : > { %v375_v42 = vmul.f32 %v374_v39, %v361_v40 }
  0xa5   : > { %v377_v43 = vadd.f32 %v376_v41, %v375_v42 }
  0xa7   : > { %378 = vst [vmem:[%s1034_s7] sm:$0x3] %v377_v43 }
  0xa8   : > { %728 = shalt.err (!%p725_p7)
}
  0xa9   : > { %s729_s9 = scalar_lea.hbm %s1050_s0, 32  ;;  %s733_s12 = scalar_lea.hbm %s1104_s4, 64 }
  0xaa   : > { %p730_p0 = scmp.ne.s32.totalorder %s1050_s0, %s729_s9  ;;  %p734_p13 = scmp.lt.u32.totalorder %s1050_s0, %s1104_s4 }
  0xab   : > { %p735_p12 = scmp.lt.u32.totalorder %s733_s12, %s729_s9  ;;  %p737_p8 = scmp.lt.u32.totalorder %s729_s9, %s1050_s0 }
  0xac   : > { %p731_p1 = pnand %p730_p0, %p1128_p9 }
  0xad   : > { %p736_p2 = por %p735_p12, %p734_p13 }
  0xae   : > { %p732_p6 = pneg %p731_p1 }
  0xaf   : > { %p738_p4 = por %p737_p8, %p736_p2 }
  0xb1   : > { %p739_p10 = pnand %p738_p4, %p732_p6 }
  0xb3   : > { %742 = shalt.err (!%p739_p10)
}
  0xb4   : > { %557 = dma.vmem_to_hbm [thread:$0]  (%p1128_p9), %s1052_s23, 32, %s1050_s0, %s380_s3  }
  0xb5 PF: > { %s405_s25 = sand.u32 1, %s785_s15   ;;  %p1129_p5 = scmp.ne.s32.totalorder %s1117_s28, 0 }
  0xb6   : > { %p1130_p11 = scmp.ge.s32.totalorder %s805_s20, 2  ;;  %s406_s11 = scalar_lea.sflag [#allocation4], %s405_s25 }
  0xb8   : > { %p571_p3 = pnand %p1130_p11, %p1129_p5 }
  0xba   : > { %780 = dma.done.wait (!%p571_p3), %s406_s11, 32  }
  0xbb   : > { %782 = vsyncadd (!%p571_p3), %s406_s11, 4294967264  ;;  %s24_s20 = sadd.s32 1, %s805_s20   ;;  %s1131_s27 = sld [smem:[#allocation14_spill]] }
  0xbc   : > { %p21_p7 = scmp.ge.s32.totalorder %s24_s20, 4   ;;  %s1132_s15 = smov %s789_s16 }
  0xbd   : > { %s1133_s16 = smov %s793_s17  ;;  %s1134_s17 = smov %s952_s5 }
  0xbe   : > { %s1135_s18 = smov %s801_s19  ;;  %23 = sbr.rel (!%p21_p7) target bundleno = 12 (0xc), region = 109 }
  0xc1   : > { %s1136_s19 = smov %s1131_s27 }
  0xc5   :  { %411 = vsyncpa [#allocation3], 1 }
  0xc6   :  { %413 = vsyncpa [#allocation3 + $0x1], 1 }
  0xc7   :  { %414 = vsyncpa [#allocation7], 1 }
  0xc8   :  { %416 = vsyncpa [#allocation7 + $0x1], 1 }
  0xc9   :  { %417 = vsyncpa [#allocation4], 1 }
  0xca   :  { %419 = vsyncpa [#allocation4 + $0x1], 1 }
  0xcb   :  { %420 = vsyncpa [#allocation5], 1 }
  0xcc   :  { %422 = vsyncpa [#allocation5 + $0x1], 1 }

</bundles_post_ra>
